<compile_context>
chip_gen: v7x
topology: tpu7x:2x2x1
jax: 0.10.0
libtpu: 0.0.40
codegen_flags: <defaults>
</compile_context>

<pallas_src>
import jax
import jax.numpy as jnp
from jax.experimental import pallas as pl
from jax.experimental.pallas import tpu as pltpu

DIM_INPUT = 15
HIDDEN = 10
NUM_CLASS = 5

PACK = 8            # original rows packed per 128-lane row
_DEFAULT_TP = 2048  # packed rows per tile (= 16384 original rows)
_MIN_STEPS = 8      # keep the grid at least this long when the batch allows


def _cdiv(a, b):
    return (a + b - 1) // b


def _round_up(a, b):
    return _cdiv(a, b) * b


def _mlp_kernel(x_ref, w1_ref, b1_ref, w2_ref, b2_ref, o_ref):
    # fc1 (packed): (tp, 120) @ (120, 80) + (1, 80), then ReLU
    h = jnp.dot(x_ref[...], w1_ref[...], preferred_element_type=jnp.float32)
    h = jnp.maximum(h + b1_ref[...], 0.0)
    # fc2 (packed): (tp, 80) @ (80, 40) + (1, 40)
    out = jnp.dot(h, w2_ref[...], preferred_element_type=jnp.float32)
    o_ref[...] = (out + b2_ref[...]).astype(o_ref.dtype)


def simple_model_forward(x, w1, b1, w2, b2, *, tb=None):
    """x: (B, 15) f32; w1: (15, 10); b1: (1, 10); w2: (10, 5); b2: (1, 5).

    Returns (B, NUM_CLASS) f32.  `tb` is an optional hint for original rows
    per tile; it is rounded/clamped so the (8,128) tiling rules always hold.
    """
    B = x.shape[0]

    # Pad the batch to a multiple of PACK (<= 7 rows) so the packing reshape
    # is a free row-major reshape.  Padded rows are independent garbage and
    # are sliced off at the end.
    B8 = _round_up(max(B, 1), PACK)
    if B8 != B:
        x = jnp.pad(x, ((0, B8 - B), (0, 0)))
    packed_B = B8 // PACK

    # Pack 8 rows per lane-row; expand params to block-diagonal form so one
    # packed matmul computes 8 independent rows at once.
    xp = x.reshape(packed_B, PACK * DIM_INPUT)
    eye = jnp.eye(PACK, dtype=w1.dtype)
    w1_blk = jnp.kron(eye, w1)                                     # (120, 80)
    w2_blk = jnp.kron(eye, w2)                                     # (80, 40)
    b1_blk = jnp.tile(jnp.reshape(b1, (1, HIDDEN)), (1, PACK))     # (1, 80)
    b2_blk = jnp.tile(jnp.reshape(b2, (1, NUM_CLASS)), (1, PACK))  # (1, 40)

    # Packed-row tile: full extent for tiny batches; otherwise a multiple of
    # 8, capped so there are >= _MIN_STEPS grid steps when the batch allows.
    if packed_B <= 8:
        tp = packed_B
    else:
        hint = _DEFAULT_TP if tb is None else max(1, _round_up(tb, PACK) // PACK)
        tp = min(hint, _cdiv(packed_B, _MIN_STEPS))
        tp = max(8, _round_up(tp, 8))
        tp = min(tp, _round_up(packed_B, 8))
    grid = (_cdiv(packed_B, tp),)   # edge block (if any) is masked by Pallas

    cost = pl.CostEstimate(
        flops=2 * packed_B * (PACK * DIM_INPUT * PACK * HIDDEN
                              + PACK * HIDDEN * PACK * NUM_CLASS),
        transcendentals=0,
        bytes_accessed=4 * (
            packed_B * PACK * (DIM_INPUT + NUM_CLASS)                 # x in, out out
            + PACK * DIM_INPUT * PACK * HIDDEN + PACK * HIDDEN        # w1_blk, b1_blk
            + PACK * HIDDEN * PACK * NUM_CLASS + PACK * NUM_CLASS),   # w2_blk, b2_blk
    )

    out = pl.pallas_call(
        _mlp_kernel,
        out_shape=jax.ShapeDtypeStruct((packed_B, PACK * NUM_CLASS), jnp.float32),
        grid_spec=pltpu.PrefetchScalarGridSpec(
            num_scalar_prefetch=0,
            grid=grid,
            in_specs=[
                # Packed x streams per batch tile.
                pl.BlockSpec((tp, PACK * DIM_INPUT), lambda i: (i, 0)),
                # Weights/biases: full block, constant index -> VMEM-resident.
                pl.BlockSpec((PACK * DIM_INPUT, PACK * HIDDEN), lambda i: (0, 0)),
                pl.BlockSpec((1, PACK * HIDDEN), lambda i: (0, 0)),
                pl.BlockSpec((PACK * HIDDEN, PACK * NUM_CLASS), lambda i: (0, 0)),
                pl.BlockSpec((1, PACK * NUM_CLASS), lambda i: (0, 0)),
            ],
            out_specs=pl.BlockSpec((tp, PACK * NUM_CLASS), lambda i: (i, 0)),
        ),
        compiler_params=pltpu.CompilerParams(
            dimension_semantics=("parallel",),
        ),
        cost_estimate=cost,
    )(xp, w1_blk, b1_blk, w2_blk, b2_blk)

    # Unpack: (packed_B, 40) -> (B8, 5) -> slice the real batch (free reshape).
    return out.reshape(B8, NUM_CLASS)[:B]


def init_params(key):
    """Deterministic synthetic parameters matching nn.Linear shapes."""
    k1, k2, k3, k4 = jax.random.split(key, 4)
    # PyTorch nn.Linear(in, out) -> weight (out, in), bias (out,).
    # Weights kept pre-transposed as (in, out) for the kernel.
    w1 = jax.random.normal(k1, (DIM_INPUT, HIDDEN), jnp.float32) * 0.1
    b1 = jax.random.normal(k2, (1, HIDDEN), jnp.float32) * 0.1
    w2 = jax.random.normal(k3, (HIDDEN, NUM_CLASS), jnp.float32) * 0.1
    b2 = jax.random.normal(k4, (1, NUM_CLASS), jnp.float32) * 0.1
    return w1, b1, w2, b2


def reference_forward(x, w1, b1, w2, b2):
    h = jnp.maximum(x @ w1 + b1, 0.0)
    return h @ w2 + b2


if __name__ == "__main__":
    key = jax.random.PRNGKey(0)
    kx, kx2, kx3, kp = jax.random.split(key, 4)

    w1, b1, w2, b2 = init_params(kp)

    # Small batch: single packed row, single grid step.
    x = jax.random.normal(kx, (8, DIM_INPUT), jnp.float32)
    out = jax.block_until_ready(simple_model_forward(x, w1, b1, w2, b2))
    ref = reference_forward(x, w1, b1, w2, b2)
    assert out.shape == (8, NUM_CLASS)
    assert jnp.allclose(out, ref, atol=1e-4, rtol=1e-4)

    # Ragged batch: exercises the <=7-row pad + pack/unpack/slice path.
    x2 = jax.random.normal(kx2, (37, DIM_INPUT), jnp.float32)
    out2 = jax.block_until_ready(simple_model_forward(x2, w1, b1, w2, b2))
    ref2 = reference_forward(x2, w1, b1, w2, b2)
    assert out2.shape == (37, NUM_CLASS)
    assert jnp.allclose(out2, ref2, atol=1e-4, rtol=1e-4)

    # Multi-step grid with a masked edge block (packed_B=25, tp=8, 4 steps).
    x3 = jax.random.normal(kx3, (200, DIM_INPUT), jnp.float32)
    out3 = jax.block_until_ready(simple_model_forward(x3, w1, b1, w2, b2, tb=64))
    ref3 = reference_forward(x3, w1, b1, w2, b2)
    assert out3.shape == (200, NUM_CLASS)
    assert jnp.allclose(out3, ref3, atol=1e-4, rtol=1e-4)

    print("KERNEL_OK")
</pallas_src>

<mosaic_0001>
module attributes {stable_mosaic.version = 11 : i64} {
  func.func @_mlp_kernel(%arg0: i32, %arg1: memref<1x120xf32, #tpu.memory_space<vmem>>, %arg2: memref<120x80xf32, #tpu.memory_space<vmem>>, %arg3: memref<1x80xf32, #tpu.memory_space<vmem>>, %arg4: memref<80x40xf32, #tpu.memory_space<vmem>>, %arg5: memref<1x40xf32, #tpu.memory_space<vmem>>, %arg6: memref<1x40xf32, #tpu.memory_space<vmem>>) attributes {dimension_semantics = [#tpu.dimension_semantics<parallel>], iteration_bounds = array<i64: 1>, scalar_prefetch = 0 : i64, scratch_operands = 0 : i64, tpu.core_type = #tpu.core_type<tc>, window_params = [{transform_indices = @transform_0, window_bounds = array<i64: 1, 120>}, {pipeline_mode = #tpu.pipeline_mode<synchronous>, transform_indices = @transform_1, window_bounds = array<i64: 120, 80>}, {pipeline_mode = #tpu.pipeline_mode<synchronous>, transform_indices = @transform_2, window_bounds = array<i64: 1, 80>}, {pipeline_mode = #tpu.pipeline_mode<synchronous>, transform_indices = @transform_3, window_bounds = array<i64: 80, 40>}, {pipeline_mode = #tpu.pipeline_mode<synchronous>, transform_indices = @transform_4, window_bounds = array<i64: 1, 40>}, {transform_indices = @transform_5, window_bounds = array<i64: 1, 40>}]} {
    %c0 = arith.constant 0 : index
    %c0_0 = arith.constant 0 : index
    %0 = vector.load %arg1[%c0, %c0_0] : memref<1x120xf32, #tpu.memory_space<vmem>>, vector<1x120xf32>
    %c0_1 = arith.constant 0 : index
    %c0_2 = arith.constant 0 : index
    %1 = vector.load %arg2[%c0_1, %c0_2] : memref<120x80xf32, #tpu.memory_space<vmem>>, vector<120x80xf32>
    %cst = arith.constant dense<0.000000e+00> : vector<1x80xf32>
    %2 = tpu.matmul %0, %1, %cst {dimension_numbers = #tpu.dot_dimension_numbers<[1], [0], [0], [1], [0, 0, 1, 1], [], []>} : vector<1x120xf32>, vector<120x80xf32>, vector<1x80xf32> -> vector<1x80xf32>
    %c0_3 = arith.constant 0 : index
    %c0_4 = arith.constant 0 : index
    %3 = vector.load %arg3[%c0_3, %c0_4] : memref<1x80xf32, #tpu.memory_space<vmem>>, vector<1x80xf32>
    %4 = arith.addf %2, %3 : vector<1x80xf32>
    %cst_5 = arith.constant 0.000000e+00 : f32
    %5 = vector.broadcast %cst_5 : f32 to vector<1x80xf32>
    %6 = arith.maximumf %4, %5 : vector<1x80xf32>
    %c0_6 = arith.constant 0 : index
    %c0_7 = arith.constant 0 : index
    %7 = vector.load %arg4[%c0_6, %c0_7] : memref<80x40xf32, #tpu.memory_space<vmem>>, vector<80x40xf32>
    %cst_8 = arith.constant dense<0.000000e+00> : vector<1x40xf32>
    %8 = tpu.matmul %6, %7, %cst_8 {dimension_numbers = #tpu.dot_dimension_numbers<[1], [0], [0], [1], [0, 0, 1, 1], [], []>} : vector<1x80xf32>, vector<80x40xf32>, vector<1x40xf32> -> vector<1x40xf32>
    %c0_9 = arith.constant 0 : index
    %c0_10 = arith.constant 0 : index
    %9 = vector.load %arg5[%c0_9, %c0_10] : memref<1x40xf32, #tpu.memory_space<vmem>>, vector<1x40xf32>
    %10 = arith.addf %8, %9 : vector<1x40xf32>
    %c0_11 = arith.constant 0 : index
    %c0_12 = arith.constant 0 : index
    %11 = vector.load %arg6[%c0_11, %c0_12] : memref<1x40xf32, #tpu.memory_space<vmem>>, vector<1x40xf32>
    tpu.vector_store %arg6[%c0_11, %c0_12], %10 {strides = array<i32>} : memref<1x40xf32, #tpu.memory_space<vmem>>, vector<1x40xf32>,
    return
  }
  func.func @transform_0(%arg0: i32) -> (i32, i32) {
    %c0_i32 = arith.constant 0 : i32
    %c0_i32_0 = arith.constant 0 : i32
    return %arg0, %c0_i32 : i32, i32
  }
  func.func @transform_1(%arg0: i32) -> (i32, i32) {
    %c0_i32 = arith.constant 0 : i32
    %c0_i32_0 = arith.constant 0 : i32
    %c0_i32_1 = arith.constant 0 : i32
    return %c0_i32, %c0_i32_0 : i32, i32
  }
  func.func @transform_2(%arg0: i32) -> (i32, i32) {
    %c0_i32 = arith.constant 0 : i32
    %c0_i32_0 = arith.constant 0 : i32
    %c0_i32_1 = arith.constant 0 : i32
    return %c0_i32, %c0_i32_0 : i32, i32
  }
  func.func @transform_3(%arg0: i32) -> (i32, i32) {
    %c0_i32 = arith.constant 0 : i32
    %c0_i32_0 = arith.constant 0 : i32
    %c0_i32_1 = arith.constant 0 : i32
    return %c0_i32, %c0_i32_0 : i32, i32
  }
  func.func @transform_4(%arg0: i32) -> (i32, i32) {
    %c0_i32 = arith.constant 0 : i32
    %c0_i32_0 = arith.constant 0 : i32
    %c0_i32_1 = arith.constant 0 : i32
    return %c0_i32, %c0_i32_0 : i32, i32
  }
  func.func @transform_5(%arg0: i32) -> (i32, i32) {
    %c0_i32 = arith.constant 0 : i32
    %c0_i32_0 = arith.constant 0 : i32
    return %arg0, %c0_i32 : i32, i32
  }
}

</mosaic_0001>

<bundles_post_ra>
// kernel: tpu_custom_call.1
= control target key start
LH: loop header
LB: loop body
LE: loop exit
PB: predicated region body
PF: predicated region fallthrough
CT: control target
= control target key end

     0   :  { %v363_v3 = vmov 0.0|0.0   ;;  %vm364_vm0 = vmmov 0   ;;  %v365_v6 = vmov 0.0   ;;  %s493_s0 = inlined_call_operand.vmem [shape: f32[1,120], index: 0, kind: input, shape index: {}]   ;;  %s494_s1 = inlined_call_operand.vmem [shape: f32[120,80], index: 1, kind: input, shape index: {}]   ;;  %s495_s2 = inlined_call_operand.vmem [shape: f32[1,80], index: 2, kind: input, shape index: {}]   ;;  %s496_s3 = inlined_call_operand.vmem [shape: f32[80,40], index: 3, kind: input, shape index: {}]   ;;  %s497_s4 = inlined_call_operand.vmem [shape: f32[1,40], index: 4, kind: input, shape index: {}]   ;;  %s498_s5 = inlined_call_operand.hbm [shape: f32[1,40], index: 5, kind: output, shape index: {}]  }
   0x1   :  { %v22_v0 = vld [vmem:[%s494_s1] sm:$0xff]  ;;  %v23_v1 = vld [vmem:[%s494_s1 + $0x8] sm:$0xff]  ;;  %v24_v2 = vld [vmem:[%s494_s1 + $0x10] sm:$0xff]  ;;  %299 = vmatprep.subr.bf16.mxu0 %v363_v3  ;;  %273 = vmatprep.mubr.msk.f32.mxu0 %vm364_vm0, %v365_v6 }
   0x2   :  { %v300_v4 = vpack.c.bf16 %v23_v1, %v22_v0  ;;  %v25_v5 = vld [vmem:[%s494_s1 + $0x18] sm:$0xff]  ;;  %320 = vmatprep.subr.bf16.mxu1 %v363_v3  ;;  %296 = vmatprep.mubr.msk.f32.mxu1 %vm364_vm0, %v365_v6  ;;  %v26_v8 = vld [vmem:[%s494_s1 + $0x20] sm:$0xff]  ;;  %v27_v9 = vld [vmem:[%s494_s1 + $0x28] sm:$0xff] }
   0x3   :  { %v303_v7 = vpack.c.bf16 %v25_v5, %v24_v2  ;;  %v113_v10 = vld [vmem:[%s496_s3] sm:$0xff]  ;;  %v114_v11 = vld [vmem:[%s496_s3 + $0x8] sm:$0xff]  ;;  %v115_v13 = vld [vmem:[%s496_s3 + $0x10] sm:$0xff]  ;;  %v306_v15 = vpack.c.bf16 %v27_v9, %v26_v8 }
   0x4   :  { %301 = vmatpush3.bf16.msra.mxu0 %v300_v4  ;;  %v321_v12 = vpack.c.bf16 %v114_v11, %v113_v10  ;;  %v116_v14 = vld [vmem:[%s496_s3 + $0x18] sm:$0xff]  ;;  %v28_v16 = vld [vmem:[%s494_s1 + $0x30] sm:$0xff] }
   0x5   :  { %302 = vmatprep.subr.bf16.mxu0 %v363_v3  ;;  %v29_v17 = vld [vmem:[%s494_s1 + $0x38] sm:$0xff]  ;;  %v324_v18 = vpack.c.bf16 %v116_v14, %v115_v13 }
   0x6   :  { %322 = vmatpush3.bf16.msra.mxu1 %v321_v12 }
   0x8   :  { %304 = vmatpush3.bf16.msra.mxu0 %v303_v7 }
   0x9   :  { %305 = vmatprep.subr.bf16.mxu0 %v363_v3 }
   0xa   :  { %10 = vsyncpa [#allocation3], 0  ;;  %323 = vmatprep.subr.bf16.mxu1 %v363_v3  ;;  %v117_v19 = vld [vmem:[%s496_s3 + $0x20] sm:$0xff]  ;;  %v118_v20 = vld [vmem:[%s496_s3 + $0x28] sm:$0xff]  ;;  %v309_v21 = vpack.c.bf16 %v29_v17, %v28_v16  ;;  %vm38_vm1 = vcmask 982016   ;;  %vm124_vm2 = vcmask 654336  }
   0xb   :  { %v30_v22 = vld [vmem:[%s494_s1 + $0x40] sm:$0xff]  ;;  %v31_v23 = vld [vmem:[%s494_s1 + $0x48] sm:$0xff]  ;;  %325 = vmatpush3.bf16.msra.mxu1 %v324_v18  ;;  %v327_v24 = vpack.c.bf16 %v118_v20, %v117_v19  ;;  %v119_v25 = vld [vmem:[%s496_s3 + $0x30] sm:$0xff]  ;;  %s366_s22 = smov [#allocation2]   ;;  %vm198_vm3 = vcmask 319488  }
   0xc   :  { %307 = vmatpush3.bf16.msra.mxu0 %v306_v15  ;;  %326 = vmatprep.subr.bf16.mxu1 %v363_v3  ;;  %v120_v26 = vld [vmem:[%s496_s3 + $0x38] sm:$0xff]  ;;  %v312_v27 = vpack.c.bf16 %v31_v23, %v30_v22  ;;  %v32_v28 = vld [vmem:[%s494_s1 + $0x50] sm:$0xff]  ;;  %v34_v32 = vld [vmem:[%s494_s1 + $0x60] sm:$0xff]  ;;  %s206_s23 = sshll.u32 %s366_s22, 4  ;;  %s207_s23 = int_to_ptr.vmem [resolvable:$true] %s206_s23 }
   0xd   :  { %308 = vmatprep.subr.bf16.mxu0 %v363_v3  ;;  %v33_v29 = vld [vmem:[%s494_s1 + $0x58] sm:$0xff]  ;;  %v330_v30 = vpack.c.bf16 %v120_v26, %v119_v25  ;;  %v35_v33 = vld [vmem:[%s494_s1 + $0x68] sm:$0xff]  ;;  %v36_v35 = vld [vmem:[%s494_s1 + $0x70] sm:$0xff]  ;;  %p344_p1 = scmp.lt.s32.totalorder %s207_s23, %s207_s23 }
   0xe   :  { %v315_v31 = vpack.c.bf16 %v33_v29, %v32_v28  ;;  %v318_v34 = vpack.c.bf16 %v35_v33, %v34_v32  ;;  %v21_v36 = vld [vmem:[%s493_s0] sm:$0x1]  ;;  %v122_v38 = vld [vmem:[%s496_s3 + $0x48] sm:$0xff] }
   0xf   :  { %328 = vmatpush3.bf16.msra.mxu1 %v327_v24  ;;  %v121_v37 = vld [vmem:[%s496_s3 + $0x40] sm:$0xff]  ;;  %s339_s3 = scalar_lea.vmem %s207_s23, 16 }
  0x10   :  { %310 = vmatpush3.bf16.msra.mxu0 %v309_v21  ;;  %329 = vmatprep.subr.bf16.mxu1 %v363_v3  ;;  %v333_v39 = vpack.c.bf16 %v122_v38, %v121_v37  ;;  %v37_v40 = vld [vmem:[%s495_s2] sm:$0x1]  ;;  %p340_p0 = scmp.ne.s32.totalorder %s207_s23, %s339_s3  ;;  %s343_s2 = scalar_lea.vmem %s207_s23, 32 }
  0x11   :  { %311 = vmatprep.subr.bf16.mxu0 %v363_v3  ;;  %v123_v45 = vld [vmem:[%s497_s4] sm:$0x1]  ;;  %p345_p2 = scmp.lt.s32.totalorder %s343_s2, %s339_s3 }
  0x13   :  { %331 = vmatpush3.bf16.msra.mxu1 %v330_v30  ;;  %p346_p3 = por %p345_p2, %p344_p1 }
  0x14   :  { %313 = vmatpush3.bf16.msra.mxu0 %v312_v27  ;;  %332 = vmatprep.subr.bf16.mxu1 %v363_v3 }
  0x15   :  { %314 = vmatprep.subr.bf16.mxu0 %v363_v3  ;;  %p347_p4 = pnand %p346_p3, %p340_p0 }
  0x17   :  { %334 = vmatpush3.bf16.msra.mxu1 %v333_v39 }
  0x18   :  { %316 = vmatpush3.bf16.msra.mxu0 %v315_v31 }
  0x19   :  { %317 = vmatprep.subr.bf16.mxu0 %v363_v3 }
  0x1c   :  { %319 = vmatpush3.bf16.msra.mxu0 %v318_v34 }
  0x1d   :  { %271 = vmatprep.subr.mxu0 %v365_v6 }
  0x20   :  { %272 = vmatpush3.msra.mxu0 %v36_v35 }
  0x21   :  { %274 = vmatmul.mubr.msk.f32.vlgmr.msra.gmra.mrb[0].mxu0 %vm38_vm1, %v21_v36 }
  0xf4   :  { %v108_v41 = vpop.f32.mrb[0].mxu0 }
  0xf5   :  { %v109_v42 = vadd.f32 %v108_v41, %v37_v40  ;;  %v275_v43 = vpop.f32.mrb[1].mxu0 }
  0xf7   :  { %v112_v44 = vmax.f32 %v109_v42, 0.0 }
  0xf9   :  { %297 = vmatmul.mubr.msk.f32.vlgmr.msra.gmra.mrb[0].mxu1 %vm124_vm2, %v112_v44 }
 0x1cc   :  { %v194_v46 = vpop.f32.mrb[0].mxu1 }
 0x1cd   :  { %v195_v47 = vadd.f32 %v194_v46, %v123_v45  ;;  %v298_v48 = vpop.f32.mrb[1].mxu1 }
 0x1cf   :  { %199 = vst.msk [vmem:[#allocation2] sm:$0x1] %vm198_vm3, %v195_v47 }
 0x1d0   :  { %350 = shalt.err (!%p347_p4)
}
 0x1d1   :  { %s351_s4 = scalar_lea.hbm %s498_s5, 16 }
 0x1d2   :  { %p352_p5 = scmp.ne.s32.totalorder %s498_s5, %s351_s4  ;;  %p355_p6 = scmp.lt.u32.totalorder %s351_s4, %s498_s5 }
 0x1d4   :  { %p357_p7 = pnand %p355_p6, %p352_p5 }
 0x1d6   :  { %360 = shalt.err (!%p357_p7)
}
 0x1d7   :  { %209 = dma.vmem_to_hbm [thread:$0]  %s207_s23, 16, %s498_s5, [#allocation3]  }
 0x1d8   :  { %361 = dma.done.wait [#allocation3], 16  }
 0x1d9   :  { %362 = vsyncadd [#allocation3], 4294967280 }
 0x1da   :  { %213 = vsyncpa [#allocation3], 1 }

</bundles_post_ra>
